<compile_context>
chip_gen: v6e
topology: v6e:2x2x1
jax: 0.10.0
libtpu: 0.0.40
codegen_flags: <defaults>
</compile_context>

<pallas_src>
import functools

import jax
import jax.numpy as jnp
from jax.experimental import pallas as pl
from jax.experimental.pallas import tpu as pltpu

LANE = 128
SUBLANE = 8
NEG_INF = -1e30  # finite "minus infinity" for key masking (avoids inf-inf NaNs)


def _round_up(x, m):
    return ((x + m - 1) // m) * m


def _tpu_defaults():
    """Per-generation tile size and scoped-VMEM limit (v7x has 64 MiB, v5e/v6e 128 MiB)."""
    vmem_cap = 128 * 1024 * 1024
    try:
        vmem_cap = int(pltpu.get_tpu_info().vmem_capacity_bytes)
    except Exception:
        pass  # non-TPU / interpret backend: keep the conservative default
    if vmem_cap <= 64 * 1024 * 1024:          # v7x-class TensorCore
        tile = 256
    else:                                      # v5e / v6e
        tile = 512
    return tile, int(vmem_cap * 3 // 4)


def prepare_attention_params(wq, bq, wk, bk, wv, bv, *, mxu_dtype=jnp.bfloat16):
    """Fuse + lane-pad the three projections ONCE (hoisted out of the per-call path).

    Returns:
      w_fused : (IN, 2*PQK + POUT) in mxu_dtype  (bf16 feeds the MXU at peak rate)
      b_fused : (1, 2*PQK + POUT) float32        (bias add / softmax stay f32)
      meta    : dict with padded/unpadded sizes
    Padded weight/bias columns are zero, so padded q/k/v columns are exactly zero
    and the attention math is unchanged.
    """
    in_size, qk_size = wq.shape
    out_size = wv.shape[1]
    pqk = _round_up(qk_size, LANE)
    pout = _round_up(out_size, LANE)

    def pad_w(w, tgt):
        return jnp.pad(w, ((0, 0), (0, tgt - w.shape[1]))).astype(mxu_dtype)

    def pad_b(b, tgt):
        return jnp.pad(b, (0, tgt - b.shape[0])).astype(jnp.float32)

    w_fused = jnp.concatenate(
        [pad_w(wq, pqk), pad_w(wk, pqk), pad_w(wv, pout)], axis=1)
    b_fused = jnp.concatenate(
        [pad_b(bq, pqk), pad_b(bk, pqk), pad_b(bv, pout)]).reshape(1, 2 * pqk + pout)
    meta = dict(pqk=pqk, pout=pout, out_size=out_size)
    return w_fused, b_fused, meta


def _flash_attention_kernel(x_q_ref, x_kv_ref, w_ref, b_ref, o_ref,
                            q_buf, m_buf, l_buf, acc_buf,
                            *, pqk, seq_len, tk, mask_keys):
    """One (batch, q_tile, kv_tile) grid step of fused-projection flash attention."""
    ki = pl.program_id(2)
    f32 = jnp.float32

    @pl.when(ki == 0)
    def _init():
        # Project this q tile once per q-tile; cache as bf16 (what the MXU consumes).
        q = jnp.dot(x_q_ref[0], w_ref[:, :pqk], preferred_element_type=f32)
        q = q + b_ref[:, :pqk]
        q_buf[...] = q.astype(q_buf.dtype)
        m_buf[...] = jnp.full_like(m_buf, -jnp.inf)
        l_buf[...] = jnp.zeros_like(l_buf)
        acc_buf[...] = jnp.zeros_like(acc_buf)

    # Project the current kv tile: k and v share one MXU pass (fused weight slice).
    kv = jnp.dot(x_kv_ref[0], w_ref[:, pqk:], preferred_element_type=f32)
    kv = kv + b_ref[:, pqk:]
    k = kv[:, :pqk].astype(q_buf.dtype)          # (TK, PQK) bf16
    v = kv[:, pqk:].astype(q_buf.dtype)          # (TK, POUT) bf16

    # scores = q @ k^T, contracting the shared last axis (no explicit XLU transpose).
    s = jax.lax.dot_general(q_buf[...], k, (((1,), (1,)), ((), ())),
                            preferred_element_type=f32)          # (TQ, TK) f32
    if mask_keys:
        key_pos = ki * tk + jax.lax.broadcasted_iota(jnp.int32, s.shape, 1)
        s = jnp.where(key_pos < seq_len, s, NEG_INF)

    # Online softmax, f32 elementwise; normalization deferred past the PV matmul.
    m_prev = m_buf[...]
    m_new = jnp.maximum(m_prev, jnp.max(s, axis=-1, keepdims=True))
    alpha = jnp.exp(m_prev - m_new)
    p = jnp.exp(s - m_new)                                        # unnormalized weights
    l_buf[...] = alpha * l_buf[...] + jnp.sum(p, axis=-1, keepdims=True)
    acc_buf[...] = alpha * acc_buf[...] + jnp.dot(
        p.astype(v.dtype), v, preferred_element_type=f32)
    m_buf[...] = m_new

    @pl.when(ki == pl.num_programs(2) - 1)
    def _finalize():
        # Exact normalization for parity with the reference softmax.
        # (pl.reciprocal(l_buf[...], approx=True) would trade ~1e-3 error for the EUP slot.)
        o_ref[0] = (acc_buf[...] / l_buf[...]).astype(o_ref.dtype)


@functools.partial(jax.jit, static_argnames=("pqk", "pout", "out_size"))
def _attention_forward(x, w_fused, b_fused, *, pqk, pout, out_size):
    B, S, IN = x.shape
    PTOT = w_fused.shape[1]
    mxu_dtype = w_fused.dtype

    tile, vmem_limit = _tpu_defaults()
    tq = tk = min(tile, _round_up(S, SUBLANE))
    s_pad = _round_up(S, tq)
    nq, nk = s_pad // tq, s_pad // tk

    xb = x.astype(mxu_dtype)
    if s_pad != S:
        xb = jnp.pad(xb, ((0, 0), (0, s_pad - S), (0, 0)))

    kernel = functools.partial(
        _flash_attention_kernel, pqk=pqk, seq_len=S, tk=tk, mask_keys=(s_pad != S))

    out_padded = pl.pallas_call(
        kernel,
        out_shape=jax.ShapeDtypeStruct((B, s_pad, pout), jnp.float32),
        grid_spec=pltpu.PrefetchScalarGridSpec(
            num_scalar_prefetch=0,
            grid=(B, nq, nk),
            in_specs=[
                pl.BlockSpec((1, tq, IN), lambda b, qi, ki: (b, qi, 0)),   # x (q rows)
                pl.BlockSpec((1, tk, IN), lambda b, qi, ki: (b, ki, 0)),   # x (kv rows)
                pl.BlockSpec((IN, PTOT), lambda b, qi, ki: (0, 0)),        # fused weight
                pl.BlockSpec((1, PTOT), lambda b, qi, ki: (0, 0)),         # fused bias
            ],
            out_specs=pl.BlockSpec((1, tq, pout), lambda b, qi, ki: (b, qi, 0)),
            scratch_shapes=[
                pltpu.VMEM((tq, pqk), mxu_dtype),      # cached q tile (bf16)
                pltpu.VMEM((tq, 1), jnp.float32),      # running max
                pltpu.VMEM((tq, 1), jnp.float32),      # running denominator
                pltpu.VMEM((tq, pout), jnp.float32),   # running numerator
            ],
        ),
        compiler_params=pltpu.CompilerParams(
            dimension_semantics=("parallel", "parallel", "arbitrary"),
            vmem_limit_bytes=vmem_limit,
        ),
    )(xb, xb, w_fused, b_fused)

    # Lane-dense stores inside the kernel; the pad trim fuses under this jit.
    return out_padded[:, :S, :out_size]


def attention_forward(x, w_fused, b_fused, meta):
    return _attention_forward(x, w_fused, b_fused,
                              pqk=meta["pqk"], pout=meta["pout"],
                              out_size=meta["out_size"])


def reference_forward(x, wq, bq, wk, bk, wv, bv, *, mxu_dtype=jnp.bfloat16):
    """Plain-JAX reference with the SAME bf16-at-the-MXU / f32-accumulate policy as
    the kernel, so the comparison isolates kernel plumbing rather than dtype policy."""
    f32 = jnp.float32

    def proj(w, b):
        return jnp.dot(x.astype(mxu_dtype), w.astype(mxu_dtype),
                       preferred_element_type=f32) + b.astype(f32)

    q, k, v = proj(wq, bq), proj(wk, bk), proj(wv, bv)
    s = jnp.einsum("bqd,bkd->bqk", q.astype(mxu_dtype), k.astype(mxu_dtype),
                   preferred_element_type=f32)
    m = jnp.max(s, axis=-1, keepdims=True)
    p = jnp.exp(s - m)
    num = jnp.einsum("bqk,bkd->bqd", p.astype(mxu_dtype), v.astype(mxu_dtype),
                     preferred_element_type=f32)
    return num / jnp.sum(p, axis=-1, keepdims=True)


if __name__ == "__main__":
    # Small shapes consistent with the module's forward: x is (batch, seq, in_size).
    B, S = 2, 8
    IN_SIZE, OUT_SIZE, QK_SIZE = 32, 32, 16

    key = jax.random.PRNGKey(0)
    kx, kq, kbq, kk, kbk, kv, kbv = jax.random.split(key, 7)

    x = jax.random.normal(kx, (B, S, IN_SIZE), dtype=jnp.float32)

    # Parameters stored as (in_size, feature_out) so both paths compute x @ W + b.
    scale = 1.0 / jnp.sqrt(jnp.float32(IN_SIZE))
    wq = jax.random.normal(kq, (IN_SIZE, QK_SIZE), jnp.float32) * scale
    bq = jax.random.normal(kbq, (QK_SIZE,), jnp.float32) * 0.1
    wk = jax.random.normal(kk, (IN_SIZE, QK_SIZE), jnp.float32) * scale
    bk = jax.random.normal(kbk, (QK_SIZE,), jnp.float32) * 0.1
    wv = jax.random.normal(kv, (IN_SIZE, OUT_SIZE), jnp.float32) * scale
    bv = jax.random.normal(kbv, (OUT_SIZE,), jnp.float32) * 0.1

    # Weight fusion / lane padding hoisted out of the forward path (done once).
    w_fused, b_fused, meta = prepare_attention_params(wq, bq, wk, bk, wv, bv)

    out = attention_forward(x, w_fused, b_fused, meta)
    out = jax.block_until_ready(out)

    ref = reference_forward(x, wq, bq, wk, bk, wv, bv)
    assert out.shape == (B, S, OUT_SIZE)
    assert bool(jnp.all(jnp.isfinite(out)))
    assert jnp.allclose(out, ref, atol=2e-2, rtol=2e-2), \
        float(jnp.max(jnp.abs(out - ref)))

    print("KERNEL_OK")
</pallas_src>

<mosaic_0001>
module attributes {stable_mosaic.version = 11 : i64} {
  func.func @_flash_attention_kernel(%arg0: i32, %arg1: i32, %arg2: i32, %arg3: memref<1x8x32xbf16, #tpu.memory_space<vmem>>, %arg4: memref<1x8x32xbf16, #tpu.memory_space<vmem>>, %arg5: memref<32x384xbf16, #tpu.memory_space<vmem>>, %arg6: memref<1x384xf32, #tpu.memory_space<vmem>>, %arg7: memref<1x8x128xf32, #tpu.memory_space<vmem>>, %arg8: memref<8x128xbf16, #tpu.memory_space<vmem>>, %arg9: memref<8x1xf32, #tpu.memory_space<vmem>>, %arg10: memref<8x1xf32, #tpu.memory_space<vmem>>, %arg11: memref<8x128xf32, #tpu.memory_space<vmem>>) attributes {dimension_semantics = [#tpu.dimension_semantics<parallel>, #tpu.dimension_semantics<parallel>, #tpu.dimension_semantics<arbitrary>], iteration_bounds = array<i64: 2, 1, 1>, scalar_prefetch = 0 : i64, scratch_operands = 4 : i64, tpu.core_type = #tpu.core_type<tc>, window_params = [{transform_indices = @transform_0, window_bounds = array<i64: 1, 8, 32>}, {transform_indices = @transform_1, window_bounds = array<i64: 1, 8, 32>}, {pipeline_mode = #tpu.pipeline_mode<synchronous>, transform_indices = @transform_2, window_bounds = array<i64: 32, 384>}, {pipeline_mode = #tpu.pipeline_mode<synchronous>, transform_indices = @transform_3, window_bounds = array<i64: 1, 384>}, {transform_indices = @transform_4, window_bounds = array<i64: 1, 8, 128>}]} {
    %c0_i32 = arith.constant 0 : i32
    %0 = arith.cmpi eq, %arg2, %c0_i32 : i32
    %1 = arith.extui %0 : i1 to i32
    %c0_i32_0 = arith.constant 0 : i32
    %2 = arith.cmpi ne, %1, %c0_i32_0 : i32
    scf.if %2 {
      %c0_26 = arith.constant 0 : index
      %c0_27 = arith.constant 0 : index
      %c0_28 = arith.constant 0 : index
      %42 = vector.load %arg3[%c0_26, %c0_27, %c0_28] : memref<1x8x32xbf16, #tpu.memory_space<vmem>>, vector<1x8x32xbf16>
      %43 = vector.shape_cast %42 : vector<1x8x32xbf16> to vector<8x32xbf16>
      %c0_29 = arith.constant 0 : index
      %c0_30 = arith.constant 0 : index
      %44 = vector.load %arg5[%c0_29, %c0_30] : memref<32x384xbf16, #tpu.memory_space<vmem>>, vector<32x128xbf16>
      %cst_31 = arith.constant dense<0.000000e+00> : vector<8x128xf32>
      %45 = tpu.matmul %43, %44, %cst_31 {dimension_numbers = #tpu.dot_dimension_numbers<[1], [0], [0], [1], [0, 0, 1, 1], [], []>} : vector<8x32xbf16>, vector<32x128xbf16>, vector<8x128xf32> -> vector<8x128xf32>
      %c0_32 = arith.constant 0 : index
      %c0_33 = arith.constant 0 : index
      %46 = vector.load %arg6[%c0_32, %c0_33] : memref<1x384xf32, #tpu.memory_space<vmem>>, vector<1x128xf32>
      %47 = vector.broadcast %46 : vector<1x128xf32> to vector<8x128xf32>
      %48 = arith.addf %45, %47 : vector<8x128xf32>
      %49 = arith.truncf %48 : vector<8x128xf32> to vector<8x128xbf16>
      %c0_34 = arith.constant 0 : index
      %c0_35 = arith.constant 0 : index
      %50 = vector.load %arg8[%c0_34, %c0_35] : memref<8x128xbf16, #tpu.memory_space<vmem>>, vector<8x128xbf16>
      tpu.vector_store %arg8[%c0_34, %c0_35], %49 {strides = array<i32>} : memref<8x128xbf16, #tpu.memory_space<vmem>>, vector<8x128xbf16>,
      %cst_36 = arith.constant 0xFF800000 : f32
      %51 = vector.broadcast %cst_36 : f32 to vector<8x1xf32>
      %c0_37 = arith.constant 0 : index
      %c0_38 = arith.constant 0 : index
      %52 = vector.load %arg9[%c0_37, %c0_38] : memref<8x1xf32, #tpu.memory_space<vmem>>, vector<8x1xf32>
      tpu.vector_store %arg9[%c0_37, %c0_38], %51 {strides = array<i32>} : memref<8x1xf32, #tpu.memory_space<vmem>>, vector<8x1xf32>,
      %cst_39 = arith.constant 0.000000e+00 : f32
      %53 = vector.broadcast %cst_39 : f32 to vector<8x1xf32>
      %c0_40 = arith.constant 0 : index
      %c0_41 = arith.constant 0 : index
      %54 = vector.load %arg10[%c0_40, %c0_41] : memref<8x1xf32, #tpu.memory_space<vmem>>, vector<8x1xf32>
      tpu.vector_store %arg10[%c0_40, %c0_41], %53 {strides = array<i32>} : memref<8x1xf32, #tpu.memory_space<vmem>>, vector<8x1xf32>,
      %cst_42 = arith.constant 0.000000e+00 : f32
      %55 = vector.broadcast %cst_42 : f32 to vector<8x128xf32>
      %c0_43 = arith.constant 0 : index
      %c0_44 = arith.constant 0 : index
      %56 = vector.load %arg11[%c0_43, %c0_44] : memref<8x128xf32, #tpu.memory_space<vmem>>, vector<8x128xf32>
      tpu.vector_store %arg11[%c0_43, %c0_44], %55 {strides = array<i32>} : memref<8x128xf32, #tpu.memory_space<vmem>>, vector<8x128xf32>,
    } else {
    }
    %c0 = arith.constant 0 : index
    %c0_1 = arith.constant 0 : index
    %c0_2 = arith.constant 0 : index
    %3 = vector.load %arg4[%c0, %c0_1, %c0_2] : memref<1x8x32xbf16, #tpu.memory_space<vmem>>, vector<1x8x32xbf16>
    %4 = vector.shape_cast %3 : vector<1x8x32xbf16> to vector<8x32xbf16>
    %c0_3 = arith.constant 0 : index
    %c128 = arith.constant 128 : index
    %5 = vector.load %arg5[%c0_3, %c128] : memref<32x384xbf16, #tpu.memory_space<vmem>>, vector<32x256xbf16>
    %cst = arith.constant dense<0.000000e+00> : vector<8x256xf32>
    %6 = tpu.matmul %4, %5, %cst {dimension_numbers = #tpu.dot_dimension_numbers<[1], [0], [0], [1], [0, 0, 1, 1], [], []>} : vector<8x32xbf16>, vector<32x256xbf16>, vector<8x256xf32> -> vector<8x256xf32>
    %c0_4 = arith.constant 0 : index
    %c128_5 = arith.constant 128 : index
    %7 = vector.load %arg6[%c0_4, %c128_5] : memref<1x384xf32, #tpu.memory_space<vmem>>, vector<1x256xf32>
    %8 = vector.broadcast %7 : vector<1x256xf32> to vector<8x256xf32>
    %9 = arith.addf %6, %8 : vector<8x256xf32>
    %10 = vector.extract_strided_slice %9 {offsets = [0, 0], sizes = [8, 128], strides = [1, 1]} : vector<8x256xf32> to vector<8x128xf32>
    %11 = arith.truncf %10 : vector<8x128xf32> to vector<8x128xbf16>
    %12 = vector.extract_strided_slice %9 {offsets = [0, 128], sizes = [8, 128], strides = [1, 1]} : vector<8x256xf32> to vector<8x128xf32>
    %13 = arith.truncf %12 : vector<8x128xf32> to vector<8x128xbf16>
    %c0_6 = arith.constant 0 : index
    %c0_7 = arith.constant 0 : index
    %14 = vector.load %arg8[%c0_6, %c0_7] : memref<8x128xbf16, #tpu.memory_space<vmem>>, vector<8x128xbf16>
    %cst_8 = arith.constant dense<0.000000e+00> : vector<8x8xf32>
    %15 = tpu.matmul %14, %11, %cst_8 {dimension_numbers = #tpu.dot_dimension_numbers<[1], [1], [0], [0], [0, 0, 1, 0], [], []>} : vector<8x128xbf16>, vector<8x128xbf16>, vector<8x8xf32> -> vector<8x8xf32>
    %c0_9 = arith.constant 0 : index
    %c0_10 = arith.constant 0 : index
    %16 = vector.load %arg9[%c0_9, %c0_10] : memref<8x1xf32, #tpu.memory_space<vmem>>, vector<8x1xf32>
    %cst_11 = arith.constant dense<0xFF800000> : vector<8xf32>
    %17 = vector.multi_reduction <maximumf>, %15, %cst_11 [1] : vector<8x8xf32> to vector<8xf32>
    %18 = vector.shape_cast %17 : vector<8xf32> to vector<8x1xf32>
    %19 = arith.maximumf %16, %18 : vector<8x1xf32>
    %20 = arith.subf %16, %19 : vector<8x1xf32>
    %21 = math.exp %20 : vector<8x1xf32>
    %22 = vector.broadcast %19 : vector<8x1xf32> to vector<8x8xf32>
    %23 = arith.subf %15, %22 : vector<8x8xf32>
    %24 = math.exp %23 : vector<8x8xf32>
    %c0_12 = arith.constant 0 : index
    %c0_13 = arith.constant 0 : index
    %25 = vector.load %arg10[%c0_12, %c0_13] : memref<8x1xf32, #tpu.memory_space<vmem>>, vector<8x1xf32>
    %26 = arith.mulf %21, %25 : vector<8x1xf32>
    %cst_14 = arith.constant dense<0.000000e+00> : vector<8xf32>
    %27 = vector.multi_reduction <add>, %24, %cst_14 [1] : vector<8x8xf32> to vector<8xf32>
    %28 = vector.shape_cast %27 : vector<8xf32> to vector<8x1xf32>
    %29 = arith.addf %26, %28 : vector<8x1xf32>
    %c0_15 = arith.constant 0 : index
    %c0_16 = arith.constant 0 : index
    %30 = vector.load %arg10[%c0_15, %c0_16] : memref<8x1xf32, #tpu.memory_space<vmem>>, vector<8x1xf32>
    tpu.vector_store %arg10[%c0_15, %c0_16], %29 {strides = array<i32>} : memref<8x1xf32, #tpu.memory_space<vmem>>, vector<8x1xf32>,
    %c0_17 = arith.constant 0 : index
    %c0_18 = arith.constant 0 : index
    %31 = vector.load %arg11[%c0_17, %c0_18] : memref<8x128xf32, #tpu.memory_space<vmem>>, vector<8x128xf32>
    %32 = vector.broadcast %21 : vector<8x1xf32> to vector<8x128xf32>
    %33 = arith.mulf %32, %31 : vector<8x128xf32>
    %34 = arith.truncf %24 : vector<8x8xf32> to vector<8x8xbf16>
    %cst_19 = arith.constant dense<0.000000e+00> : vector<8x128xf32>
    %35 = tpu.matmul %34, %13, %cst_19 {dimension_numbers = #tpu.dot_dimension_numbers<[1], [0], [0], [1], [0, 0, 1, 1], [], []>} : vector<8x8xbf16>, vector<8x128xbf16>, vector<8x128xf32> -> vector<8x128xf32>
    %36 = arith.addf %33, %35 : vector<8x128xf32>
    %c0_20 = arith.constant 0 : index
    %c0_21 = arith.constant 0 : index
    %37 = vector.load %arg11[%c0_20, %c0_21] : memref<8x128xf32, #tpu.memory_space<vmem>>, vector<8x128xf32>
    tpu.vector_store %arg11[%c0_20, %c0_21], %36 {strides = array<i32>} : memref<8x128xf32, #tpu.memory_space<vmem>>, vector<8x128xf32>,
    %c0_22 = arith.constant 0 : index
    %c0_23 = arith.constant 0 : index
    %38 = vector.load %arg9[%c0_22, %c0_23] : memref<8x1xf32, #tpu.memory_space<vmem>>, vector<8x1xf32>
    tpu.vector_store %arg9[%c0_22, %c0_23], %19 {strides = array<i32>} : memref<8x1xf32, #tpu.memory_space<vmem>>, vector<8x1xf32>,
    %c0_i32_24 = arith.constant 0 : i32
    %39 = arith.cmpi eq, %arg2, %c0_i32_24 : i32
    %40 = arith.extui %39 : i1 to i32
    %c0_i32_25 = arith.constant 0 : i32
    %41 = arith.cmpi ne, %40, %c0_i32_25 : i32
    scf.if %41 {
      %c0_26 = arith.constant 0 : index
      %c0_27 = arith.constant 0 : index
      %42 = vector.load %arg11[%c0_26, %c0_27] : memref<8x128xf32, #tpu.memory_space<vmem>>, vector<8x128xf32>
      %c0_28 = arith.constant 0 : index
      %c0_29 = arith.constant 0 : index
      %43 = vector.load %arg10[%c0_28, %c0_29] : memref<8x1xf32, #tpu.memory_space<vmem>>, vector<8x1xf32>
      %44 = vector.broadcast %43 : vector<8x1xf32> to vector<8x128xf32>
      %45 = arith.divf %42, %44 : vector<8x128xf32>
      %c0_30 = arith.constant 0 : index
      %c0_31 = arith.constant 0 : index
      %c0_32 = arith.constant 0 : index
      %46 = vector.load %arg7[%c0_30, %c0_31, %c0_32] : memref<1x8x128xf32, #tpu.memory_space<vmem>>, vector<1x8x128xf32>
      %47 = vector.shape_cast %46 : vector<1x8x128xf32> to vector<8x128xf32>
      %48 = vector.shape_cast %45 : vector<8x128xf32> to vector<1x8x128xf32>
      tpu.vector_store %arg7[%c0_30, %c0_31, %c0_32], %48 {strides = array<i32>} : memref<1x8x128xf32, #tpu.memory_space<vmem>>, vector<1x8x128xf32>,
    } else {
    }
    return
  }
  func.func @transform_0(%arg0: i32, %arg1: i32, %arg2: i32) -> (i32, i32, i32) {
    %c0_i32 = arith.constant 0 : i32
    %c0_i32_0 = arith.constant 0 : i32
    return %arg0, %arg1, %c0_i32 : i32, i32, i32
  }
  func.func @transform_1(%arg0: i32, %arg1: i32, %arg2: i32) -> (i32, i32, i32) {
    %c0_i32 = arith.constant 0 : i32
    %c0_i32_0 = arith.constant 0 : i32
    return %arg0, %arg2, %c0_i32 : i32, i32, i32
  }
  func.func @transform_2(%arg0: i32, %arg1: i32, %arg2: i32) -> (i32, i32) {
    %c0_i32 = arith.constant 0 : i32
    %c0_i32_0 = arith.constant 0 : i32
    %c0_i32_1 = arith.constant 0 : i32
    return %c0_i32, %c0_i32_0 : i32, i32
  }
  func.func @transform_3(%arg0: i32, %arg1: i32, %arg2: i32) -> (i32, i32) {
    %c0_i32 = arith.constant 0 : i32
    %c0_i32_0 = arith.constant 0 : i32
    %c0_i32_1 = arith.constant 0 : i32
    return %c0_i32, %c0_i32_0 : i32, i32
  }
  func.func @transform_4(%arg0: i32, %arg1: i32, %arg2: i32) -> (i32, i32, i32) {
    %c0_i32 = arith.constant 0 : i32
    %c0_i32_0 = arith.constant 0 : i32
    return %arg0, %arg1, %c0_i32 : i32, i32, i32
  }
}

</mosaic_0001>

<bundles_post_ra>
// kernel: _attention_forward.1
= control target key start
LH: loop header
LB: loop body
LE: loop exit
PB: predicated region body
PF: predicated region fallthrough
CT: control target
= control target key end

     0   :  { %9 = vsyncpa [#allocation7], 0  ;;  %s1111_s0 = inlined_call_operand.vmem [shape: bf16[2,8,32], index: 0, kind: input, shape index: {}, may-alias: {0,1}]   ;;  %s1112_s1 = inlined_call_operand.vmem [shape: bf16[2,8,32], index: 1, kind: input, shape index: {}, may-alias: {0,1}]   ;;  %s1113_s2 = inlined_call_operand.hbm [shape: bf16[32,384], index: 2, kind: input, shape index: {}]   ;;  %s1114_s3 = inlined_call_operand.vmem [shape: f32[1,384], index: 3, kind: input, shape index: {}]   ;;  %s1115_s4 = inlined_call_operand.hbm [shape: f32[2,8,128], index: 4, kind: output, shape index: {}]  }
   0x1   :  { %10 = vsyncpa [#allocation8], 0 }
   0x2   :  { %12 = vsyncpa [#allocation8 + $0x1], 0  ;;  %s964_s15 = smov 0   ;;  %s966_s16 = smov 0  }
   0x3   :  { %s968_s17 = smov 0   ;;  %s970_s18 = smov 0  }
   0x4   :  { %s972_s19 = smov 0   ;;  %s974_s20 = smov 0  }
   0x5 LB: > { %s684_s21 = sadd.s32 4294967295, %s929_s20   ;;  %s685_s22 = sadd.s32 4294967294, %s929_s20   ;;  %s929_s20 = sphi %s974_s20, %s18_s20   ;;  %s925_s19 = sphi %s972_s19, %s1124_s19   ;;  %s921_s18 = sphi %s970_s18, %s1123_s18   ;;  %s917_s17 = sphi %s968_s17, %s1122_s17   ;;  %s913_s16 = sphi %s966_s16, %s1121_s16   ;;  %s909_s15 = sphi %s964_s15, %s1120_s15  }
   0x6   : > { %s37_s23 = sadd.s32 1, %s925_s19  ;;  %s144_s24 = sadd.s32 1, %s917_s17 }
   0x7   : > { %p39_p0 = scmp.ge.s32.totalorder %s37_s23, 2  ;;  %p154_p1 = scmp.ne.s32.totalorder %s917_s17, %s913_s16 }
   0x8   : > { %p155_p2 = scmp.eq.s32.totalorder %s684_s21, 1  ;;  %p160_p3 = scmp.ne.s32.totalorder %s913_s16, %s909_s15 }
   0x9   : > { %s1126_s23 = smov (%p39_p0, %s37_s23), 0  ;;  %p161_p5 = scmp.eq.s32.totalorder %s685_s22, 1 }
   0xa   : > { %p1004_p4 = por %p155_p2, %p154_p1  ;;  %s139_s26 = ssub.s32 %s925_s19, %s1126_s23 }
   0xb   : > { %p686_p6 = scmp.ge.s32.totalorder %s929_s20, 1  ;;  %p142_p7 = scmp.eq.s32.totalorder %s139_s26, 0 }
   0xc   : > { %p1011_p8 = por %p161_p5, %p160_p3  ;;  %p168_p9 = scmp.lt.s32.totalorder %s929_s20, 3 }
   0xd   : > { %s1017_s28 = scalar_select %p142_p7, %s917_s17, %s144_s24  }
   0xe   : > { %p1019_p10 = pnand %p686_p6, %p168_p9  ;;  %p1023_p11 = scmp.eq.s32.totalorder %s684_s21, 0 }
   0xf   : > { %s931_s5 = smov [#allocation6]  }
  0x10   : > { %p741_p12 = pneg %p1019_p10  ;;  %s180_s6 = sshll.u32 %s931_s5, 4  ;;  %s181_s6 = int_to_ptr.vmem [resolvable:$true] %s180_s6 }
  0x11   : > { %s834_s7 = scalar_lea.vmem %s181_s6, 768  ;;  %p842_p5 = scmp.lt.s32.totalorder %s181_s6, %s181_s6 }
  0x12   : > { %p742_p13 = pnand %p1023_p11, %p741_p12  ;;  %p835_p1 = scmp.ne.s32.totalorder %s181_s6, %s834_s7 }
  0x13   : > { %p843_p6 = scmp.lt.s32.totalorder %s834_s7, %s834_s7 }
  0x14   : > { %p825_p0 = pneg %p742_p13 }
  0x15   : > { %p844_p7 = por %p843_p6, %p842_p5 }
  0x16   : > { %p837_p2 = pnand %p835_p1, %p825_p0 }
  0x18   : > { %p838_p3 = pneg %p837_p2 }
  0x1a   : > { %p845_p9 = pnand %p844_p7, %p838_p3 }
  0x1c   : > { %848 = shalt.err (!%p845_p9)
}
  0x1d   : > { %s932_s8 = smov 192   ;;  %s933_s9 = smov 12  }
  0x1e   : > { %744 = dma.hbm_to_vmem [thread:$0]  (!%p742_p13), %s1113_s2, 768, %s181_s6, [#allocation7], %s932_s8, %s932_s8, %s933_s9  }
  0x1f   : > { %219 = sbr.rel (%p1019_p10) target bundleno = 1031 (0x407), region = 36 }
  0x24   : > { %900 = dma.done.wait (%p1023_p11), [#allocation7], 768  }
  0x25   : > { %902 = vsyncadd (%p1023_p11), [#allocation7], 4294966528  ;;  %p254_p12 = scmp.lt.s32.totalorder %s921_s18, 1  ;;  %v934_v0 = vmov 0.0   ;;  %vm935_vm0 = vmmov 0   ;;  %v936_v1 = vmov 0   ;;  %v354_v10 = vlaneseq }
  0x26   : > { %715 = vmatprep.subr.bf16.mxu0 %v934_v0  ;;  %719 = vmatprep.mubr.msk.bf16.mxu0 %vm935_vm0, %v934_v0  ;;  %v809_v2 = vld [vmem:[#allocation6 + $0x18] ss:$12 sps:$4 sm:$0xff]   ;;  %v810_v3 = vld [vmem:[#allocation6 + $0x20] ss:$12 sps:$4 sm:$0xff]   ;;  %v812_v4 = vld [vmem:[#allocation6 + $0x1c] ss:$12 sps:$4 sm:$0xff]  }
  0x27   : > { %s255_s12 = scalar_select %p254_p12, %s921_s18, 1  ;;  %420 = vmatprep.mubr.bf16.mxu1 %v936_v1  ;;  %807 = vset.pattern.permute.xlu0 %v936_v1  ;;  %v813_v5 = vld [vmem:[#allocation6] ss:$12 sps:$4 sm:$0xff]   ;;  %v814_v6 = vld [vmem:[#allocation6 + $0x8] ss:$12 sps:$4 sm:$0xff]   ;;  %vm297_vm1 = vcmask 261120  }
  0x28   : > { %808 = vset.pattern.permute.xlu1 %v936_v1  ;;  %716 = vmatpush3.bf16.msra.mxu0 %v809_v2  ;;  %v816_v7 = vld [vmem:[#allocation6 + $0x4] ss:$12 sps:$4 sm:$0xff]   ;;  %v355_v11 = vshrl.u32 %v354_v10, 7  ;;  %v352_v13 = vld [vmem:[%s1114_s3 + $0x1] sm:$0x3]  ;;  %vm508_vm2 = vcmask 1043456  }
  0x29   : > { %s692_s13 = sshll.u32 %s255_s12, 2  ;;  %400 = vmatprep.subr.bf16.mxu1 %v810_v3  ;;  %717 = vmatprep.subr.bf16.mxu0 %v934_v0  ;;  %v694_v15 = vld [vmem:[%s1114_s3] ss:$0 sm:$0xff]  ;;  %vm343_vm3 = vcmask 7168   ;;  %v937_v34 = vmov -inf   ;;  %vm473_vm4 = vcmask 64512  }
  0x2a   : > { %s260_s22 = scalar_lea.vmem %s1111_s0, %s692_s13  ;;  %401 = vmatpush1.bf16.msra.mxu1 %v812_v4  ;;  %s267_s29 = scalar_lea.vmem %s1112_s1, %s692_s13  ;;  %v356_v12 = vsub.s32 0, %v355_v11  ;;  %v360_v14 = vsub.s32 1, %v355_v11  ;;  %344 = vst.msk [vmem:[#allocation3] sm:$0xff] %vm343_vm3, %v937_v34  ;;  %345 = vst.msk [vmem:[#allocation4] sm:$0xff] %vm343_vm3, %v934_v0 }
  0x2b   : > { %402 = vmatprep.subr.bf16.mxu1 %v814_v6  ;;  %v273_v8 = vld [vmem:[%s260_s22] sm:$0xf]  ;;  %s251_s8 = sand.u32 1, %s913_s16   ;;  %s705_s10 = sshll.u32 %s921_s18, 7 }
  0x2c   : > { %718 = vmatpush3.bf16.msra.mxu0 %v813_v5  ;;  %v347_v9 = vld [vmem:[%s267_s29] sm:$0xf]  ;;  %v357_v16 = vrot.slane %v352_v13, %v356_v12  ;;  %v361_v19 = vrot.slane %v352_v13, %v360_v14  ;;  %s691_s9 = sshll.u32 %s251_s8, 3  ;;  %s581_s21 = scalar_lea.hbm %s1115_s4, %s705_s10 }
  0x2d   : > { %723 = vmatprep.subr.bf16.mxu0 %v934_v0  ;;  %s253_s11 = scalar_lea.vmem [#allocation9], %s691_s9  ;;  %s569_s22 = scalar_lea.sflag [#allocation8], %s251_s8 }
  0x2e   : > { %403 = vmatpush1.bf16.msra.mxu1 %v816_v7  ;;  %s583_s12 = sshll.u32 %s253_s11, 4  ;;  %s938_s26 = smov [#allocation9]   ;;  %s584_s12 = int_to_ptr.vmem [resolvable:$true] %s583_s12 }
  0x2f   : > { %720 = vmatmul.mubr.msk.bf16.vlgmr.msra.gmra.mxu0 %vm297_vm1, %v273_v8  ;;  %729 = vmatprep.subr.bf16.mxu1 %v934_v0  ;;  %s849_s24 = scalar_lea.vmem %s584_s12, 128  ;;  %s853_s29 = sshll.u32 %s938_s26, 4  ;;  %s854_s29 = int_to_ptr.vmem [resolvable:$false] %s853_s29 }
  0x30   : > { %725 = vmatprep.mubr.msk.bf16.mxu0 %vm935_vm0, %v934_v0  ;;  %p850_p10 = scmp.ne.s32.totalorder %s584_s12, %s849_s24  ;;  %s855_s18 = scalar_lea.vmem %s854_s29, 256 }
  0x31   : > { %702 = vmatmul.mubr.msk.bf16.vlgmr.msra.gmra.mxu1 %vm297_vm1, %v347_v9  ;;  %v472_v40 = vld [vmem:[#allocation3] sm:$0xff]  ;;  %v489_v52 = vld [vmem:[#allocation4] sm:$0xff]  ;;  %p856_p0 = scmp.lt.s32.totalorder %s584_s12, %s854_s29  ;;  %p857_p1 = scmp.lt.s32.totalorder %s855_s18, %s849_s24 }
  0x32   : > { %731 = vmatprep.mubr.msk.bf16.mxu1 %vm935_vm0, %v934_v0  ;;  %p851_p11 = pnand %p850_p10, %p1004_p4 }
  0x33   : > { %p858_p2 = por %p857_p1, %p856_p0 }
  0x34   : > { %p852_p13 = pneg %p851_p11 }
  0x36   : > { %p859_p3 = pnand %p858_p2, %p852_p13 }
  0xef   : > { %v335_v17 = vpop.f32.mrf.mxu0 }
  0xf0   : > { %v336_v18 = vadd.f32 %v694_v15, %v335_v17 }
  0xf1   : > { %v422_v20 = vpop.f32.mrf.mxu1  ;;  %v721_v21 = vpop.f32.mrf.mxu0 }
  0xf2   : > { %v341_v22 = vpack.c.bf16 %v336_v18, %v336_v18  ;;  %v423_v23 = vadd.f32 %v422_v20, %v357_v16 }
  0xf3   : > { %v424_v24 = vpop.f32.mrf.mxu1  ;;  %v338_v25 = vpop.f32.mrf.mxu0 }
  0xf4   : > { %342 = vst [vmem:[#allocation2] sm:$0xf] %v341_v22  ;;  %v429_v26 = vpack.c.bf16 %v423_v23, %v423_v23  ;;  %v425_v27 = vadd.f32 %v424_v24, %v361_v19 }
  0xf5   : > { %v426_v28 = vpop.f32.mrf.mxu1  ;;  %v722_v29 = vpop.f32.mrf.mxu0 }
  0xf6   : > { %v430_v30 = vpack.c.bf16 %v425_v27, %v425_v27  ;;  %724 = vmatpush3.bf16.xpose.msra.mxu0 %v429_v26 }
  0xf7   : > { %v427_v31 = vpop.f32.mrf.mxu1 }
  0xf8   : > { %v510_v32 = vsel %vm508_vm2, %v430_v30, 0 }
  0xf9   : > { %730 = vmatpush3.bf16.msra.mxu1 %v510_v32 }
  0xfb   : > { %v431_v33 = vld [vmem:[#allocation2] sm:$0xf] }
  0xfd   : > { %726 = vmatmul.mubr.bf16.vlgmr.msra.gmra.mxu0 %v431_v33 }
 0x1bd   : > { %v466_v35 = vpop.f32.mrf.mxu0 }
 0x1be   : > { %v474_v36 = vsel %vm473_vm4, %v466_v35, -inf }
 0x1bf   : > { %475 = vmax.xlane.f32.xlu0 %v474_v36  ;;  %v727_v37 = vpop.f32.mrf.mxu0 }
 0x1c1   : > { %v469_v38 = vpop.f32.mrf.mxu0 }
 0x1c3   : > { %v728_v39 = vpop.f32.mrf.mxu0 }
 0x248   : > { %v476_v41 = vpop.xlane.xlu0 %475 }
 0x249   : > { %v477_v42 = vmax.f32 %v472_v40, %v476_v41 }
 0x24b   : > { %v478_v43 = vsub.f32 %v472_v40, %v477_v42  ;;  %554 = vst.msk [vmem:[#allocation3] sm:$0xff] %vm343_vm3, %v477_v42  ;;  %483 = vperm.xlu0 %807, %v477_v42  }
 0x24d   : > { %v479_v50 = vmul.f32 1.442695, %v478_v43 }
 0x2c6   : > { %v484_v44 = vpop.permute.xlu0 %483 }
 0x2c7   : > { %v486_v45 = vsub.f32 %v466_v35, %v484_v44 }
 0x2c9   : > { %v487_v46 = vmul.f32 1.442695, %v486_v45 }
 0x2cb   : > { %817 = vpow2.f32 %v487_v46 }
 0x2cc   : > { %819 = vpow2.f32 %v479_v50 }
 0x2d8   : > { %v818_v47 = vpop.eup %817 }
 0x2d9   : > { %v491_v48 = vsel %vm473_vm4, %v818_v47, 0.0  ;;  %v504_v49 = vpack.c.bf16 %v818_v47, %v818_v47  ;;  %v820_v51 = vpop.eup %819 }
 0x2da   : > { %492 = vadd.xlane.f32.xlu1 %v491_v48  ;;  %v490_v53 = vmul.f32 %v820_v51, %v489_v52 }
 0x2db   : > { %732 = vmatmul.mubr.msk.bf16.vlgmr.msra.gmra.mxu1 %vm473_vm4, %v504_v49 }
 0x363   : > { %v493_v54 = vpop.xlane.xlu1 %492 }
 0x364   : > { %v494_v55 = vadd.f32 %v493_v54, %v490_v53 }
 0x366   : > { %496 = vst.msk [vmem:[#allocation4] sm:$0xff] %vm343_vm3, %v494_v55 }
 0x36d   : > { %v559_v56 = vld [vmem:[#allocation4] sm:$0xff] }
 0x36e   : > { %562 = vperm.xlu1 %808, %v559_v56  }
 0x372   : > { %500 = vperm.xlu1 %808, %v820_v51  }
 0x39b   : > { %v546_v57 = vpop.f32.mrf.mxu1 }
 0x39d   : > { %v733_v58 = vpop.f32.mrf.mxu1 }
 0x39f   : > { %v549_v59 = vpop.f32.mrf.mxu1 }
 0x3a1   : > { %v734_v60 = vpop.f32.mrf.mxu1 }
 0x3e9   : > { %v563_v61 = vpop.permute.xlu1 %562 }
 0x3ea   : > { %821 = vrcp.f32 %v563_v61 }
 0x3ed   : > { %v501_v62 = vpop.permute.xlu1 %500 }
 0x3ee   : > { %v503_v63 = vmul.f32 0.0, %v501_v62 }
 0x3f0   : > { %v552_v0 = vadd.f32 %v546_v57, %v503_v63 }
 0x3f7   : > { %v822_v1 = vpop.eup %821 }
 0x3f8   : > { %v566_v2 = vmul.f32 %v822_v1, %v552_v0 }
 0x3fa   : > { %567 = vst [vmem:[%s253_s11] sm:$0xff] %v566_v2 }
 0x3fb   : > { %862 = shalt.err (!%p859_p3)
}
 0x3fc   : > { %s863_s30 = scalar_lea.hbm %s581_s21, 128  ;;  %s867_s7 = scalar_lea.hbm %s1115_s4, 256 }
 0x3fd   : > { %p864_p5 = scmp.ne.s32.totalorder %s581_s21, %s863_s30  ;;  %p868_p9 = scmp.lt.s32.totalorder %s581_s21, %s1115_s4 }
 0x3fe   : > { %p869_p12 = scmp.lt.s32.totalorder %s867_s7, %s863_s30 }
 0x3ff   : > { %p865_p6 = pnand %p864_p5, %p1004_p4 }
 0x400   : > { %p870_p10 = por %p869_p12, %p868_p9 }
 0x401   : > { %p866_p7 = pneg %p865_p6 }
 0x403   : > { %p871_p11 = pnand %p870_p10, %p866_p7 }
 0x405   : > { %874 = shalt.err (!%p871_p11)
}
 0x406   : > { %739 = dma.vmem_to_hbm [thread:$0]  (%p1004_p4), %s584_s12, 128, %s581_s21, %s569_s22  }
 0x407 PF: > { %p751_p13 = scmp.ge.s32.totalorder %s929_s20, 2  ;;  %s595_s10 = sand.u32 1, %s909_s15  }
 0x408   : > { %s596_s11 = scalar_lea.sflag [#allocation8], %s595_s10 }
 0x409   : > { %p746_p0 = pnand %p751_p13, %p1011_p8 }
 0x40b   : > { %p747_p1 = pneg %p746_p0 }
 0x40d   : > { %904 = dma.done.wait (%p747_p1), %s596_s11, 128  }
 0x40e   : > { %906 = vsyncadd (%p747_p1), %s596_s11, 4294967168  ;;  %s18_s20 = sadd.s32 1, %s929_s20   ;;  %s1120_s15 = smov %s913_s16 }
 0x40f   : > { %p15_p2 = scmp.ge.s32.totalorder %s18_s20, 4   ;;  %s1121_s16 = smov %s917_s17 }
 0x410   : > { %s1122_s17 = smov %s1017_s28  ;;  %s1123_s18 = smov %s925_s19 }
 0x411   : > { %s1124_s19 = smov %s1126_s23  ;;  %17 = sbr.rel (!%p15_p2) target bundleno = 5 (0x5), region = 87 }
 0x416   :  { %601 = vsyncpa [#allocation7], 1 }
 0x417   :  { %603 = vsyncpa [#allocation7 + $0x1], 1 }
 0x418   :  { %604 = vsyncpa [#allocation8], 1 }
 0x419   :  { %606 = vsyncpa [#allocation8 + $0x1], 1 }

</bundles_post_ra>
